<compile_context>
chip_gen: v7x
topology: tpu7x:2x2x1
jax: 0.10.0
libtpu: 0.0.40
codegen_flags: <defaults>
</compile_context>

<pallas_src>
from math import ceil

import jax
import jax.numpy as jnp
import numpy as np
from jax.experimental import pallas as pl
from jax.experimental.pallas import tpu as pltpu


# ------------------------- module-construction glue -------------------------

def _round_up(x, m):
    return ((x + m - 1) // m) * m


def make_channel_params(irrep_dims, multiplicity_out, pad_to_alignment=1):
    """Reproduce MakeWeightedChannels.__init__ (irreps with mul==1).

    irrep_dims: list of per-irrep dimensions (e.g. [1, 3, 5] for 0e+1o+2e).
    Returns (w_index, num_irreps, D_padded, weight_numel, G2, T) where
      G2: (M*I, M*D) block-diagonal one-hot gather  (static)
      T : (D,   M*D) one-hot lane-tiling matrix     (static)
    """
    num_irreps = len(irrep_dims)
    w_index = []
    for i, dim in enumerate(irrep_dims):
        w_index += [i] * dim
    total_dim = sum(irrep_dims)
    n_pad = int(ceil(total_dim / pad_to_alignment)) * pad_to_alignment - total_dim
    w_index += [w_index[-1]] * n_pad
    d_padded = len(w_index)
    weight_numel = num_irreps * multiplicity_out

    M, I, D = multiplicity_out, num_irreps, d_padded
    wi = np.asarray(w_index)

    # Block-diagonal gather: G2[m*I + i, m*D + d] = 1  iff  w_index[d] == i.
    # Weight layout is 'e (m i)' so flat weight index m*I + i matches rows.
    g2 = np.zeros((M * I, M * D), dtype=np.float32)
    for m in range(M):
        g2[m * I + wi, m * D + np.arange(D)] = 1.0

    # Lane-tiling matrix: T[d, m*D + d] = 1 for every m (replicates the edge
    # vector across the M channel copies, on the MXU).
    t = np.zeros((D, M * D), dtype=np.float32)
    for m in range(M):
        t[np.arange(D), m * D + np.arange(D)] = 1.0

    return (np.asarray(w_index, dtype=np.int32), num_irreps, d_padded,
            weight_numel, jnp.asarray(g2), jnp.asarray(t))


# --------------------------------- kernel -----------------------------------

def _weighted_channels_kernel(edge_ref, w_ref, g2_ref, t_ref, o_ref):
    # edge_ref: (TE, D)       f32
    # w_ref   : (TE, M*I)     f32   (original 2-D weight layout)
    # g2_ref  : (M*I, M*D)    f32   static block-diagonal one-hot gather
    # t_ref   : (D,   M*D)    f32   static one-hot lane-tiling matrix
    # o_ref   : (TE, M*D)     f32/bf16  lane-dense output tile
    w_exp = jnp.dot(w_ref[...], g2_ref[...],
                    preferred_element_type=jnp.float32)        # (TE, M*D)
    e_exp = jnp.dot(edge_ref[...], t_ref[...],
                    preferred_element_type=jnp.float32)        # (TE, M*D)
    # Multiply in f32 (VPU), cast only at the store (bf16 VALU absent on v5e).
    o_ref[...] = (e_exp * w_exp).astype(o_ref.dtype)


# --------------------------------- wrapper ----------------------------------

def make_weighted_channels(edge_attr, weights, gather_g2, tile_mat,
                           multiplicity_out, num_irreps, *,
                           edge_tile=2048, out_dtype=jnp.float32,
                           min_grid_blocks=2, vmem_block_budget=24 << 20):
    """edge_attr: (E, D), weights: (E, M*I)  ->  out (E, M, D) in `out_dtype`."""
    E, D = edge_attr.shape
    M, I = multiplicity_out, num_irreps
    MI, MD = M * I, M * D
    assert weights.shape == (E, MI)
    assert gather_g2.shape == (MI, MD)
    assert tile_mat.shape == (D, MD)

    out_bytes = jnp.dtype(out_dtype).itemsize

    # --- Padding policy: pad E only to the 8-sublane quantum, never to a tile
    # multiple.  The grid below uses cdiv; the boundary block's out-of-range
    # rows are masked on store and sliced off after the call.
    e_pad = _round_up(max(E, 8), 8)
    if e_pad != E:
        edge_attr = jnp.pad(edge_attr, ((0, e_pad - E), (0, 0)))
        weights = jnp.pad(weights, ((0, e_pad - E), (0, 0)))

    # --- VMEM-aware tile choice.  Blocks are lane-padded to 128 in VMEM, so a
    # (tile, 16) or (tile, 24) f32 input block really costs tile*128*4 bytes.
    # row_bytes_db = bytes per edge row across the three streamed arrays,
    # double-buffered (x2).
    row_bytes_db = 2 * (_round_up(D, 128) * 4 +            # edge block
                        _round_up(MI, 128) * 4 +           # weight block
                        _round_up(MD, 128) * out_bytes)    # output block
    max_tile_for_budget = max(8, (vmem_block_budget // row_bytes_db) // 8 * 8)

    tile = min(edge_tile, e_pad, max_tile_for_budget)
    # Keep at least `min_grid_blocks` blocks when the problem is big enough so
    # dimension_semantics=("parallel",) can shard the edge axis across v7x's
    # two TensorCores (on single-TC v5e/v6e this is just a sequential loop).
    if e_pad >= min_grid_blocks * 1024:
        tile = min(tile, _round_up(pl.cdiv(e_pad, min_grid_blocks), 8))
    tile = max(8, _round_up(tile, 8))

    grid = (pl.cdiv(e_pad, tile),)

    # Explicit VMEM limit covering the double-buffered blocks + the two static
    # one-hot constants + headroom (v5e's scoped default is only 16 MiB).
    const_bytes = 2 * (_round_up(MI, 8) * _round_up(MD, 128) * 4 +
                       _round_up(D, 8) * _round_up(MD, 128) * 4)
    vmem_limit = min(tile * row_bytes_db + const_bytes + (4 << 20), 48 << 20)

    # Only the real work: E*M*D elementwise multiplies (the one-hot matmuls
    # are data movement, not useful FLOPs) and the true HBM traffic.
    cost = pl.CostEstimate(
        flops=e_pad * MD,
        transcendentals=0,
        bytes_accessed=(4 * e_pad * D + 4 * e_pad * MI
                        + out_bytes * e_pad * MD + 4 * (MI * MD + D * MD)),
    )

    out_flat = pl.pallas_call(
        _weighted_channels_kernel,
        out_shape=jax.ShapeDtypeStruct((e_pad, MD), out_dtype),
        grid_spec=pltpu.PrefetchScalarGridSpec(
            num_scalar_prefetch=0,
            grid=grid,
            in_specs=[
                pl.BlockSpec((tile, D), lambda e: (e, 0)),
                pl.BlockSpec((tile, MI), lambda e: (e, 0)),
                pl.BlockSpec((MI, MD), lambda e: (0, 0)),
                pl.BlockSpec((D, MD), lambda e: (0, 0)),
            ],
            out_specs=pl.BlockSpec((tile, MD), lambda e: (e, 0)),
        ),
        compiler_params=pltpu.CompilerParams(
            dimension_semantics=("parallel",),
            vmem_limit_bytes=int(vmem_limit),
        ),
        cost_estimate=cost,
    )(edge_attr, weights, gather_g2, tile_mat)

    # Slice off padded edges; reshape lane-dense (E, M*D) back to (E, M, D).
    return out_flat[:E].reshape(E, M, D)


# --------------------------------- driver -----------------------------------

if __name__ == "__main__":
    # Synthetic irreps: 1x0e + 1x1o + 1x2e -> dims [1, 3, 5], total 9,
    # padded to alignment 8 -> D = 16 (padding reuses the last irrep index).
    irrep_dims = [1, 3, 5]
    pad_to_alignment = 8
    multiplicity_out = 8         # M*D = 128 -> full-lane output tile
    num_edges = 37               # deliberately NOT a multiple of 8 or the tile

    (w_index, num_irreps, D, weight_numel,
     gather_g2, tile_mat) = make_channel_params(
        irrep_dims, multiplicity_out, pad_to_alignment)

    key = jax.random.PRNGKey(0)
    k1, k2 = jax.random.split(key)
    # edge_attr = (padded) spherical harmonics per edge; weights come from an
    # external MLP in the real model -- both are just inputs here.
    edge_attr = jax.random.normal(k1, (num_edges, D), dtype=jnp.float32)
    weights = jax.random.normal(k2, (num_edges, weight_numel), dtype=jnp.float32)

    # f32 output here so the reference check is bit-exact; pass
    # out_dtype=jnp.bfloat16 to cut HBM write traffic if numerics allow.
    out = make_weighted_channels(edge_attr, weights, gather_g2, tile_mat,
                                 multiplicity_out, num_irreps,
                                 edge_tile=2048, out_dtype=jnp.float32)
    out = jax.block_until_ready(out)

    # Pure-JAX reference of torch.einsum('ed,emd->emd', ...) semantics.
    w3 = weights.reshape(num_edges, multiplicity_out, num_irreps)
    w_gathered = jnp.take(w3, jnp.asarray(w_index), axis=2)        # (E, M, D)
    ref = edge_attr[:, None, :] * w_gathered
    np.testing.assert_allclose(np.asarray(out), np.asarray(ref),
                               rtol=1e-5, atol=1e-5)

    print("KERNEL_OK")
</pallas_src>

<mosaic_0001>
module attributes {stable_mosaic.version = 11 : i64} {
  func.func @_weighted_channels_kernel(%arg0: i32, %arg1: memref<40x16xf32, #tpu.memory_space<vmem>>, %arg2: memref<40x24xf32, #tpu.memory_space<vmem>>, %arg3: memref<24x128xf32, #tpu.memory_space<vmem>>, %arg4: memref<16x128xf32, #tpu.memory_space<vmem>>, %arg5: memref<40x128xf32, #tpu.memory_space<vmem>>) attributes {dimension_semantics = [#tpu.dimension_semantics<parallel>], iteration_bounds = array<i64: 1>, scalar_prefetch = 0 : i64, scratch_operands = 0 : i64, tpu.core_type = #tpu.core_type<tc>, window_params = [{transform_indices = @transform_0, window_bounds = array<i64: 40, 16>}, {transform_indices = @transform_1, window_bounds = array<i64: 40, 24>}, {pipeline_mode = #tpu.pipeline_mode<synchronous>, transform_indices = @transform_2, window_bounds = array<i64: 24, 128>}, {pipeline_mode = #tpu.pipeline_mode<synchronous>, transform_indices = @transform_3, window_bounds = array<i64: 16, 128>}, {transform_indices = @transform_4, window_bounds = array<i64: 40, 128>}]} {
    %c0 = arith.constant 0 : index
    %c0_0 = arith.constant 0 : index
    %0 = vector.load %arg2[%c0, %c0_0] : memref<40x24xf32, #tpu.memory_space<vmem>>, vector<40x24xf32>
    %c0_1 = arith.constant 0 : index
    %c0_2 = arith.constant 0 : index
    %1 = vector.load %arg3[%c0_1, %c0_2] : memref<24x128xf32, #tpu.memory_space<vmem>>, vector<24x128xf32>
    %cst = arith.constant dense<0.000000e+00> : vector<40x128xf32>
    %2 = tpu.matmul %0, %1, %cst {dimension_numbers = #tpu.dot_dimension_numbers<[1], [0], [0], [1], [0, 0, 1, 1], [], []>} : vector<40x24xf32>, vector<24x128xf32>, vector<40x128xf32> -> vector<40x128xf32>
    %c0_3 = arith.constant 0 : index
    %c0_4 = arith.constant 0 : index
    %3 = vector.load %arg1[%c0_3, %c0_4] : memref<40x16xf32, #tpu.memory_space<vmem>>, vector<40x16xf32>
    %c0_5 = arith.constant 0 : index
    %c0_6 = arith.constant 0 : index
    %4 = vector.load %arg4[%c0_5, %c0_6] : memref<16x128xf32, #tpu.memory_space<vmem>>, vector<16x128xf32>
    %cst_7 = arith.constant dense<0.000000e+00> : vector<40x128xf32>
    %5 = tpu.matmul %3, %4, %cst_7 {dimension_numbers = #tpu.dot_dimension_numbers<[1], [0], [0], [1], [0, 0, 1, 1], [], []>} : vector<40x16xf32>, vector<16x128xf32>, vector<40x128xf32> -> vector<40x128xf32>
    %6 = arith.mulf %5, %2 : vector<40x128xf32>
    %c0_8 = arith.constant 0 : index
    %c0_9 = arith.constant 0 : index
    %7 = vector.load %arg5[%c0_8, %c0_9] : memref<40x128xf32, #tpu.memory_space<vmem>>, vector<40x128xf32>
    tpu.vector_store %arg5[%c0_8, %c0_9], %6 {strides = array<i32>} : memref<40x128xf32, #tpu.memory_space<vmem>>, vector<40x128xf32>,
    return
  }
  func.func @transform_0(%arg0: i32) -> (i32, i32) {
    %c0_i32 = arith.constant 0 : i32
    %c0_i32_0 = arith.constant 0 : i32
    return %arg0, %c0_i32 : i32, i32
  }
  func.func @transform_1(%arg0: i32) -> (i32, i32) {
    %c0_i32 = arith.constant 0 : i32
    %c0_i32_0 = arith.constant 0 : i32
    return %arg0, %c0_i32 : i32, i32
  }
  func.func @transform_2(%arg0: i32) -> (i32, i32) {
    %c0_i32 = arith.constant 0 : i32
    %c0_i32_0 = arith.constant 0 : i32
    %c0_i32_1 = arith.constant 0 : i32
    return %c0_i32, %c0_i32_0 : i32, i32
  }
  func.func @transform_3(%arg0: i32) -> (i32, i32) {
    %c0_i32 = arith.constant 0 : i32
    %c0_i32_0 = arith.constant 0 : i32
    %c0_i32_1 = arith.constant 0 : i32
    return %c0_i32, %c0_i32_0 : i32, i32
  }
  func.func @transform_4(%arg0: i32) -> (i32, i32) {
    %c0_i32 = arith.constant 0 : i32
    %c0_i32_0 = arith.constant 0 : i32
    return %arg0, %c0_i32 : i32, i32
  }
}

</mosaic_0001>

<bundles_post_ra>
// kernel: tpu_custom_call.1
= control target key start
LH: loop header
LB: loop body
LE: loop exit
PB: predicated region body
PF: predicated region fallthrough
CT: control target
= control target key end

     0   :  { %v372_v3 = vmov 0.0|0.0   ;;  %vm373_vm0 = vmmov 0   ;;  %v374_v7 = vmov 0.0   ;;  %vm139_vm1 = vcmask 130048   ;;  %s480_s0 = inlined_call_operand.vmem [shape: f32[40,16], index: 0, kind: input, shape index: {}]   ;;  %s481_s1 = inlined_call_operand.vmem [shape: f32[40,24], index: 1, kind: input, shape index: {}]   ;;  %s482_s2 = inlined_call_operand.vmem [shape: f32[24,128], index: 2, kind: input, shape index: {}]   ;;  %s483_s3 = inlined_call_operand.vmem [shape: f32[16,128], index: 3, kind: input, shape index: {}]   ;;  %s484_s4 = inlined_call_operand.hbm [shape: f32[40,128], index: 4, kind: output, shape index: {}]  }
   0x1   :  { %v23_v0 = vld [vmem:[%s482_s2] sm:$0xff]  ;;  %v24_v1 = vld [vmem:[%s482_s2 + $0x8] sm:$0xff]  ;;  %336 = vmatprep.subr.bf16.mxu0 %v372_v3  ;;  %339 = vmatprep.subr.bf16.mxu1 %v372_v3  ;;  %v25_v8 = vld [vmem:[%s482_s2 + $0x10] sm:$0xff]  ;;  %vm26_vm2 = vcmask 195584  }
   0x2   :  { %v137_v2 = vld [vmem:[%s483_s3] sm:$0xff]  ;;  %v337_v4 = vpack.c.bf16 %v24_v1, %v23_v0  ;;  %v138_v5 = vld [vmem:[%s483_s3 + $0x8] sm:$0xff]  ;;  %321 = vmatprep.mubr.msk.f32.mxu1 %vm373_vm0, %v374_v7  ;;  %302 = vmatprep.mubr.msk.f32.mxu0 %vm373_vm0, %v374_v7 }
   0x3   :  { %v340_v6 = vpack.c.bf16 %v138_v5, %v137_v2  ;;  %v132_v9 = vld [vmem:[%s480_s0] sm:$0xff] }
   0x4   :  { %338 = vmatpush3.bf16.msra.mxu0 %v337_v4  ;;  %v18_v10 = vld [vmem:[%s481_s1] sm:$0xff] }
   0x5   :  { %341 = vmatpush3.bf16.msra.mxu1 %v340_v6  ;;  %300 = vmatprep.subr.mxu0 %v374_v7 }
   0x6   :  { %9 = vsyncpa [#allocation3], 0  ;;  %v133_v11 = vld [vmem:[%s480_s0 + $0x8] sm:$0xff]  ;;  %v134_v13 = vld [vmem:[%s480_s0 + $0x10] sm:$0xff] }
   0x7   :  { %v19_v12 = vld [vmem:[%s481_s1 + $0x8] sm:$0xff]  ;;  %v20_v14 = vld [vmem:[%s481_s1 + $0x10] sm:$0xff]  ;;  %v135_v15 = vld [vmem:[%s480_s0 + $0x18] sm:$0xff] }
   0x8   :  { %301 = vmatpush3.msra.mxu0 %v25_v8  ;;  %322 = vmatmul.mubr.msk.f32.vlgmr.msra.gmra.mrb[0].mxu1 %vm139_vm1, %v132_v9  ;;  %v21_v16 = vld [vmem:[%s481_s1 + $0x18] sm:$0xff]  ;;  %v136_v17 = vld [vmem:[%s480_s0 + $0x20] sm:$0xff]  ;;  %s375_s0 = smov [#allocation2]  }
   0x9   :  { %303 = vmatmul.mubr.msk.f32.vlgmr.msra.gmra.mrb[0].mxu0 %vm26_vm2, %v18_v10  ;;  %324 = vmatprep.mubr.msk.f32.mxu1 %vm373_vm0, %v374_v7  ;;  %v22_v18 = vld [vmem:[%s481_s1 + $0x20] sm:$0xff]  ;;  %s260_s1 = sshll.u32 %s375_s0, 4  ;;  %s261_s1 = int_to_ptr.vmem [resolvable:$true] %s260_s1 }
   0xa   :  { %305 = vmatprep.mubr.msk.f32.mxu0 %vm373_vm0, %v374_v7  ;;  %s348_s17 = scalar_lea.vmem %s261_s1, 640  ;;  %p353_p1 = scmp.lt.s32.totalorder %s261_s1, %s261_s1 }
   0xb   :  { %p349_p0 = scmp.ne.s32.totalorder %s261_s1, %s348_s17  ;;  %p354_p2 = scmp.lt.s32.totalorder %s348_s17, %s348_s17 }
   0xc   :  { %325 = vmatmul.mubr.msk.f32.gmra.mrb[2].mxu1 %vm139_vm1, %v133_v11 }
   0xd   :  { %306 = vmatmul.mubr.msk.f32.gmra.mrb[2].mxu0 %vm26_vm2, %v19_v12  ;;  %327 = vmatprep.mubr.msk.f32.mxu1 %vm373_vm0, %v374_v7  ;;  %p355_p3 = por %p354_p2, %p353_p1 }
   0xe   :  { %308 = vmatprep.mubr.msk.f32.mxu0 %vm373_vm0, %v374_v7 }
   0xf   :  { %p356_p4 = pnand %p355_p3, %p349_p0 }
  0x10   :  { %328 = vmatmul.mubr.msk.f32.gmra.mrb[4].mxu1 %vm139_vm1, %v134_v13 }
  0x11   :  { %309 = vmatmul.mubr.msk.f32.gmra.mrb[4].mxu0 %vm26_vm2, %v20_v14  ;;  %330 = vmatprep.mubr.msk.f32.mxu1 %vm373_vm0, %v374_v7 }
  0x12   :  { %311 = vmatprep.mubr.msk.f32.mxu0 %vm373_vm0, %v374_v7 }
  0x14   :  { %331 = vmatmul.mubr.msk.f32.gmra.mrb[6].mxu1 %vm139_vm1, %v135_v15 }
  0x15   :  { %312 = vmatmul.mubr.msk.f32.gmra.mrb[6].mxu0 %vm26_vm2, %v21_v16  ;;  %333 = vmatprep.mubr.msk.f32.mxu1 %vm373_vm0, %v374_v7 }
  0x16   :  { %314 = vmatprep.mubr.msk.f32.mxu0 %vm373_vm0, %v374_v7 }
  0x18   :  { %334 = vmatmul.mubr.msk.f32.gmra.mrb[8].mxu1 %vm139_vm1, %v136_v17 }
  0x19   :  { %315 = vmatmul.mubr.msk.f32.gmra.mrb[8].mxu0 %vm26_vm2, %v22_v18 }
  0xdb   :  { %v221_v19 = vpop.f32.mrb[0].mxu1 }
  0xdc   :  { %v108_v20 = vpop.f32.mrb[0].mxu0  ;;  %v323_v21 = vpop.f32.mrb[1].mxu1 }
  0xdd   :  { %v245_v22 = vmul.f32 %v221_v19, %v108_v20  ;;  %v304_v23 = vpop.f32.mrb[1].mxu0 }
  0xdf   :  { %250 = vst [vmem:[#allocation2] sm:$0xff] %v245_v22  ;;  %v226_v24 = vpop.f32.mrb[2].mxu1 }
  0xe0   :  { %v113_v25 = vpop.f32.mrb[2].mxu0  ;;  %v326_v26 = vpop.f32.mrb[3].mxu1 }
  0xe1   :  { %v246_v27 = vmul.f32 %v226_v24, %v113_v25  ;;  %v307_v28 = vpop.f32.mrb[3].mxu0 }
  0xe3   :  { %251 = vst [vmem:[#allocation2 + $0x8] sm:$0xff] %v246_v27  ;;  %v231_v29 = vpop.f32.mrb[4].mxu1 }
  0xe4   :  { %v118_v30 = vpop.f32.mrb[4].mxu0  ;;  %v329_v31 = vpop.f32.mrb[5].mxu1 }
  0xe5   :  { %v247_v32 = vmul.f32 %v231_v29, %v118_v30  ;;  %v310_v33 = vpop.f32.mrb[5].mxu0 }
  0xe7   :  { %252 = vst [vmem:[#allocation2 + $0x10] sm:$0xff] %v247_v32  ;;  %v236_v34 = vpop.f32.mrb[6].mxu1 }
  0xe8   :  { %v123_v35 = vpop.f32.mrb[6].mxu0  ;;  %v332_v36 = vpop.f32.mrb[7].mxu1 }
  0xe9   :  { %v248_v37 = vmul.f32 %v236_v34, %v123_v35  ;;  %v313_v38 = vpop.f32.mrb[7].mxu0 }
  0xeb   :  { %253 = vst [vmem:[#allocation2 + $0x18] sm:$0xff] %v248_v37  ;;  %v241_v39 = vpop.f32.mrb[8].mxu1 }
  0xec   :  { %v128_v40 = vpop.f32.mrb[8].mxu0  ;;  %v335_v41 = vpop.f32.mrb[9].mxu1 }
  0xed   :  { %v249_v42 = vmul.f32 %v241_v39, %v128_v40  ;;  %v316_v43 = vpop.f32.mrb[9].mxu0 }
  0xef   :  { %254 = vst [vmem:[#allocation2 + $0x20] sm:$0xff] %v249_v42 }
  0xf0   :  { %359 = shalt.err (!%p356_p4)
}
  0xf1   :  { %s360_s20 = scalar_lea.hbm %s484_s4, 640 }
  0xf2   :  { %p361_p5 = scmp.ne.s32.totalorder %s484_s4, %s360_s20  ;;  %p364_p6 = scmp.lt.u32.totalorder %s360_s20, %s484_s4 }
  0xf4   :  { %p366_p7 = pnand %p364_p6, %p361_p5 }
  0xf6   :  { %369 = shalt.err (!%p366_p7)
}
  0xf7   :  { %s376_s25 = smov 128   ;;  %s377_s26 = smov 8  }
  0xf8   :  { %266 = dma.vmem_to_hbm [thread:$0]  %s261_s1, 640, %s484_s4, [#allocation3], %s376_s25, %s376_s25, %s377_s26  }
  0xf9   :  { %370 = dma.done.wait [#allocation3], 640  }
  0xfa   :  { %371 = vsyncadd [#allocation3], 4294966656 }
  0xfb   :  { %270 = vsyncpa [#allocation3], 1 }

</bundles_post_ra>
